<compile_context>
chip_gen: v7x
topology: tpu7x:2x2x1
jax: 0.10.0
libtpu: 0.0.40
codegen_flags: <defaults>
</compile_context>

<pallas_src>
import functools
import math

import jax
import jax.numpy as jnp
from jax.experimental import pallas as pl
from jax.experimental.pallas import tpu as pltpu


def _rmsnorm_kernel(x_ref, g_ref, o_ref, *, eps):
    # x_ref: (block_rows, dim), g_ref: (1, dim) f32 already scaled by sqrt(dim)
    x = x_ref[...].astype(jnp.float32)
    ss = jnp.sum(x * x, axis=-1, keepdims=True)           # (block_rows, 1)
    # x / max(sqrt(ss), eps)  ==  x * rsqrt(max(ss, eps^2))   (rsqrt -> EUP)
    inv = jax.lax.rsqrt(jnp.maximum(ss, eps * eps))
    o_ref[...] = ((x * inv) * g_ref[...]).astype(o_ref.dtype)


def _round_up(a, m):
    return (a + m - 1) // m * m


def rmsnorm(x, gamma, *, eps=1e-12):
    """x: (..., dim), gamma: (dim,). Returns same shape/dtype as x."""
    orig_shape = x.shape
    dim = orig_shape[-1]
    assert gamma.shape == (dim,)

    rows = 1
    for s in orig_shape[:-1]:
        rows *= s
    rows = max(rows, 1)

    # Reshapes are bitcasts (no HBM copies).
    x2d = x.reshape(rows, dim)
    gamma2d = (gamma.astype(jnp.float32) * (float(dim) ** 0.5)).reshape(1, dim)

    itemsize = jnp.dtype(x.dtype).itemsize
    row_multiple = {4: 8, 2: 16, 1: 32}.get(itemsize, 8)

    # --- generation-aware VMEM budgets ------------------------------------
    try:
        vmem_capacity = int(pltpu.get_tpu_info().vmem_capacity_bytes)
    except Exception:
        vmem_capacity = 64 * 1024 * 1024        # conservative (v7x-safe) default
    if vmem_capacity >= 100 * 1024 * 1024:      # v5e / v6e: 128 MiB VMEM
        vmem_limit = 64 * 1024 * 1024
        block_budget = 48 * 1024 * 1024
    else:                                       # v7x: 64 MiB VMEM per TC
        vmem_limit = 48 * 1024 * 1024
        block_budget = 28 * 1024 * 1024

    # VMEM bytes per element: double-buffered in + out (2*2*itemsize) plus
    # ~3 f32 compute temporaries (x_f32, x*x, y) for the live block.
    bytes_per_elt = 4 * itemsize + 3 * 4
    max_block_elems = max(1, block_budget // bytes_per_elt)
    block_rows = max(row_multiple,
                     (max_block_elems // dim) // row_multiple * row_multiple)

    # Prefer >= 8 grid steps (>= 4 per v7x TensorCore), but never shrink
    # blocks below ~4 MiB of input just to get more steps.
    min_rows_4mib = _round_up(pl.cdiv(4 * 1024 * 1024, dim * itemsize), row_multiple)
    rows_for_8_steps = _round_up(pl.cdiv(rows, 8), row_multiple)
    block_rows = min(block_rows, max(rows_for_8_steps, min_rows_4mib))
    block_rows = max(row_multiple, block_rows)

    if block_rows >= rows:
        # Single full-extent block: always layout-legal, no ragged handling.
        block_rows = rows
    grid_rows = pl.cdiv(rows, block_rows)

    # Deeper input buffering only if blocks are small (hide DMA issue latency).
    in_block_bytes = block_rows * dim * itemsize
    x_spec_kwargs = {}
    if grid_rows >= 3 and in_block_bytes < (1 * 1024 * 1024):
        x_spec_kwargs["pipeline_mode"] = pl.Buffered(3)

    kernel = functools.partial(_rmsnorm_kernel, eps=eps)

    out2d = pl.pallas_call(
        kernel,
        out_shape=jax.ShapeDtypeStruct((rows, dim), x.dtype),
        grid=(grid_rows,),
        in_specs=[
            pl.BlockSpec((block_rows, dim), lambda i: (i, 0), **x_spec_kwargs),
            pl.BlockSpec((1, dim), lambda i: (0, 0)),
        ],
        out_specs=pl.BlockSpec((block_rows, dim), lambda i: (i, 0)),
        compiler_params=pltpu.CompilerParams(
            dimension_semantics=("parallel",),
            vmem_limit_bytes=vmem_limit,
        ),
    )(x2d, gamma2d)

    return out2d.reshape(orig_shape)


def rmsnorm_ref(x, gamma, eps=1e-12):
    xf = x.astype(jnp.float32)
    norm = jnp.sqrt(jnp.sum(xf * xf, axis=-1, keepdims=True))
    y = xf / jnp.maximum(norm, eps)
    return (y * (xf.shape[-1] ** 0.5) * gamma.astype(jnp.float32)).astype(x.dtype)


if __name__ == "__main__":
    key = jax.random.PRNGKey(0)
    batch, seq, dim = 2, 8, 32

    kx, _ = jax.random.split(key)
    x = jax.random.normal(kx, (batch, seq, dim), dtype=jnp.float32)
    # nn.Parameter(torch.ones(dim)) -> deterministic ones init
    gamma = jnp.ones((dim,), dtype=jnp.float32)

    out = rmsnorm(x, gamma)
    out = jax.block_until_ready(out)

    ref = rmsnorm_ref(x, gamma)
    assert out.shape == x.shape and out.dtype == x.dtype
    assert jnp.allclose(out, ref, atol=1e-5, rtol=1e-5)

    print("KERNEL_OK")
</pallas_src>

<mosaic_0001>
module attributes {stable_mosaic.version = 11 : i64} {
  func.func @_rmsnorm_kernel(%arg0: i32, %arg1: memref<16x32xf32, #tpu.memory_space<vmem>>, %arg2: memref<1x32xf32, #tpu.memory_space<vmem>>, %arg3: memref<16x32xf32, #tpu.memory_space<vmem>>) attributes {dimension_semantics = [#tpu.dimension_semantics<parallel>], iteration_bounds = array<i64: 1>, scalar_prefetch = 0 : i64, scratch_operands = 0 : i64, tpu.core_type = #tpu.core_type<tc>, window_params = [{transform_indices = @transform_0, window_bounds = array<i64: 16, 32>}, {pipeline_mode = #tpu.pipeline_mode<synchronous>, transform_indices = @transform_1, window_bounds = array<i64: 1, 32>}, {transform_indices = @transform_2, window_bounds = array<i64: 16, 32>}]} {
    %c0 = arith.constant 0 : index
    %c0_0 = arith.constant 0 : index
    %0 = vector.load %arg1[%c0, %c0_0] : memref<16x32xf32, #tpu.memory_space<vmem>>, vector<16x32xf32>
    %1 = arith.mulf %0, %0 : vector<16x32xf32>
    %cst = arith.constant dense<0.000000e+00> : vector<16xf32>
    %2 = vector.multi_reduction <add>, %1, %cst [1] : vector<16x32xf32> to vector<16xf32>
    %3 = vector.shape_cast %2 : vector<16xf32> to vector<16x1xf32>
    %cst_1 = arith.constant 1.000000e-24 : f32
    %4 = vector.broadcast %cst_1 : f32 to vector<16x1xf32>
    %5 = arith.maximumf %3, %4 : vector<16x1xf32>
    %6 = math.rsqrt %5 : vector<16x1xf32>
    %7 = vector.broadcast %6 : vector<16x1xf32> to vector<16x32xf32>
    %8 = arith.mulf %0, %7 : vector<16x32xf32>
    %c0_2 = arith.constant 0 : index
    %c0_3 = arith.constant 0 : index
    %9 = vector.load %arg2[%c0_2, %c0_3] : memref<1x32xf32, #tpu.memory_space<vmem>>, vector<1x32xf32>
    %10 = vector.broadcast %9 : vector<1x32xf32> to vector<16x32xf32>
    %11 = arith.mulf %8, %10 : vector<16x32xf32>
    %c0_4 = arith.constant 0 : index
    %c0_5 = arith.constant 0 : index
    %12 = vector.load %arg3[%c0_4, %c0_5] : memref<16x32xf32, #tpu.memory_space<vmem>>, vector<16x32xf32>
    tpu.vector_store %arg3[%c0_4, %c0_5], %11 {strides = array<i32>} : memref<16x32xf32, #tpu.memory_space<vmem>>, vector<16x32xf32>,
    return
  }
  func.func @transform_0(%arg0: i32) -> (i32, i32) {
    %c0_i32 = arith.constant 0 : i32
    %c0_i32_0 = arith.constant 0 : i32
    return %arg0, %c0_i32 : i32, i32
  }
  func.func @transform_1(%arg0: i32) -> (i32, i32) {
    %c0_i32 = arith.constant 0 : i32
    %c0_i32_0 = arith.constant 0 : i32
    %c0_i32_1 = arith.constant 0 : i32
    return %c0_i32, %c0_i32_0 : i32, i32
  }
  func.func @transform_2(%arg0: i32) -> (i32, i32) {
    %c0_i32 = arith.constant 0 : i32
    %c0_i32_0 = arith.constant 0 : i32
    return %arg0, %c0_i32 : i32, i32
  }
}

</mosaic_0001>

<bundles_post_ra>
// kernel: tpu_custom_call.1
= control target key start
LH: loop header
LB: loop body
LE: loop exit
PB: predicated region body
PF: predicated region fallthrough
CT: control target
= control target key end

     0   :  { %7 = vsyncpa [#allocation3], 0  ;;  %s184_s0 = inlined_call_operand.hbm [shape: f32[16,32], index: 0, kind: input, shape index: {}]   ;;  %s185_s1 = inlined_call_operand.vmem [shape: f32[1,32], index: 1, kind: input, shape index: {}]   ;;  %s186_s2 = inlined_call_operand.hbm [shape: f32[16,32], index: 2, kind: output, shape index: {}]  }
   0x1   :  { %8 = vsyncpa [#allocation4], 0  ;;  %s128_s9 = smov [#allocation2]   ;;  %s80_s13 = scalar_lea.hbm %s184_s0, 256 }
   0x2   :  { %s14_s10 = sshll.u32 %s128_s9, 4  ;;  %p81_p0 = scmp.ne.s32.totalorder %s184_s0, %s80_s13  ;;  %s15_s10 = int_to_ptr.vmem [resolvable:$true] %s14_s10 }
   0x3   :  { %p84_p1 = scmp.lt.u32.totalorder %s80_s13, %s184_s0 }
   0x5   :  { %p86_p2 = pnand %p84_p1, %p81_p0 }
   0x7   :  { %89 = shalt.err (!%p86_p2)
}
   0x8   :  { %s90_s18 = scalar_lea.vmem %s15_s10, 256  ;;  %p95_p4 = scmp.lt.s32.totalorder %s15_s10, %s15_s10 }
   0x9   :  { %p91_p3 = scmp.ne.s32.totalorder %s15_s10, %s90_s18  ;;  %p96_p5 = scmp.lt.s32.totalorder %s90_s18, %s90_s18 }
   0xb   :  { %p97_p6 = por %p96_p5, %p95_p4 }
   0xd   :  { %p98_p7 = pnand %p97_p6, %p91_p3 }
   0xf   :  { %101 = shalt.err (!%p98_p7)
}
  0x10   :  { %s129_s19 = smov 128   ;;  %s130_s20 = smov 8  }
  0x11   :  { %20 = dma.hbm_to_vmem [thread:$0]  %s184_s0, 256, %s15_s10, [#allocation3], %s129_s19, %s129_s19, %s130_s20  }
  0x12   :  { %124 = dma.done.wait [#allocation3], 256  }
  0x13   :  { %125 = vsyncadd [#allocation3], 4294967040  ;;  %v26_v0 = vld [vmem:[#allocation2] sm:$0xff]  ;;  %vm30_vm0 = vcmask 261120   ;;  %v27_v1 = vld [vmem:[#allocation2 + $0x8] sm:$0xff]  ;;  %s131_s24 = smov [#allocation5]  }
  0x14   :  { %v28_v2 = vmul.f32 %v26_v0, %v26_v0  ;;  %v29_v3 = vmul.f32 %v27_v1, %v27_v1  ;;  %v71_v11 = vld [vmem:[%s185_s1] ss:$0 sm:$0xff]  ;;  %s59_s25 = sshll.u32 %s131_s24, 4  ;;  %s60_s25 = int_to_ptr.vmem [resolvable:$true] %s59_s25 }
  0x15   :  { %s102_s26 = scalar_lea.vmem %s60_s25, 256  ;;  %p107_p9 = scmp.lt.s32.totalorder %s60_s25, %s60_s25 }
  0x16   :  { %v31_v4 = vsel %vm30_vm0, %v28_v2, 0.0  ;;  %v34_v5 = vsel %vm30_vm0, %v29_v3, 0.0  ;;  %p103_p8 = scmp.ne.s32.totalorder %s60_s25, %s102_s26  ;;  %p108_p10 = scmp.lt.s32.totalorder %s102_s26, %s102_s26 }
  0x17   :  { %32 = vadd.xlane.f32.xlu0 %v31_v4 }
  0x18   :  { %p109_p11 = por %p108_p10, %p107_p9 }
  0x1a   :  { %p110_p12 = pnand %p109_p11, %p103_p8 }
  0x1b   :  { %35 = vadd.xlane.f32.xlu0 %v34_v5 }
  0xa4   :  { %v33_v6 = vpop.xlane.xlu0 %32 }
  0xa5   :  { %v37_v7 = vmax.f32 %v33_v6, 1e-24 }
  0xa7   :  { %76 = vrsqrt.f32 %v37_v7 }
  0xa8   :  { %v36_v8 = vpop.xlane.xlu0 %35 }
  0xa9   :  { %v38_v9 = vmax.f32 %v36_v8, 1e-24 }
  0xab   :  { %78 = vrsqrt.f32 %v38_v9 }
  0xb1   :  { %v77_v10 = vpop.eup %76 }
  0xb2   :  { %v41_v12 = vmul.f32 %v77_v10, %v26_v0 }
  0xb4   :  { %v50_v13 = vmul.f32 %v71_v11, %v41_v12 }
  0xb5   :  { %v79_v14 = vpop.eup %78 }
  0xb6   :  { %v42_v15 = vmul.f32 %v79_v14, %v27_v1  ;;  %52 = vst.msk [vmem:[#allocation5] sm:$0xff] %vm30_vm0, %v50_v13 }
  0xb8   :  { %v51_v16 = vmul.f32 %v71_v11, %v42_v15 }
  0xba   :  { %53 = vst.msk [vmem:[#allocation5 + $0x8] sm:$0xff] %vm30_vm0, %v51_v16 }
  0xbb   :  { %113 = shalt.err (!%p110_p12)
}
  0xbc   :  { %s114_s28 = scalar_lea.hbm %s186_s2, 256 }
  0xbd   :  { %p115_p13 = scmp.ne.s32.totalorder %s186_s2, %s114_s28  ;;  %p118_p0 = scmp.lt.u32.totalorder %s114_s28, %s186_s2 }
  0xbf   :  { %p120_p1 = pnand %p118_p0, %p115_p13 }
  0xc1   :  { %123 = shalt.err (!%p120_p1)
}
  0xc2   :  { %65 = dma.vmem_to_hbm [thread:$0]  %s60_s25, 256, %s186_s2, [#allocation4], %s129_s19, %s129_s19, %s130_s20  }
  0xc3   :  { %126 = dma.done.wait [#allocation4], 256  }
  0xc4   :  { %127 = vsyncadd [#allocation4], 4294967040 }
  0xc5   :  { %69 = vsyncpa [#allocation3], 1 }
  0xc6   :  { %70 = vsyncpa [#allocation4], 1 }

</bundles_post_ra>
